<compile_context>
chip_gen: v7x
topology: tpu7x:2x2x1
jax: 0.10.0
libtpu: 0.0.40
codegen_flags: <defaults>
</compile_context>

<pallas_src>
import functools
import math

import jax
import jax.numpy as jnp
from jax.experimental import pallas as pl
from jax.experimental.pallas import tpu as pltpu


# ----------------------------- kernel ---------------------------------------

def _transformer_layer_kernel(x_ref, wqkv_ref, bqkv_ref, wo_ref, bo_ref,
                              w1_ref, w2_ref, o_ref, *, num_heads):
    """Fused TransformerLayer for one batch element.

    x_ref    : (1, L, C)   input tokens for this batch element
    wqkv_ref : (C, 3C)     folded+stacked q/k/v projection (scale folded in q)
    bqkv_ref : (1, 3C)     folded q/k/v bias
    wo_ref   : (C, C)      attention out-projection (transposed)
    bo_ref   : (1, C)
    w1_ref   : (C, C)      fc1 (transposed)
    w2_ref   : (C, C)      fc2 (transposed)
    o_ref    : (1, L, C)
    """
    x = x_ref[0].astype(jnp.float32)                       # (L, C)
    L, C = x.shape
    d = C // num_heads

    # Single lane-dense QKV projection (bias + scale already folded).
    qkv = jnp.dot(x, wqkv_ref[...], preferred_element_type=jnp.float32)
    qkv = qkv + bqkv_ref[...]                              # (L, 3C)
    q = qkv[:, 0 * C:1 * C]                                # already * 1/sqrt(d)
    k = qkv[:, 1 * C:2 * C]
    v = qkv[:, 2 * C:3 * C]

    # Per-head attention (num_heads is small & static -> unrolled Python loop,
    # everything stays in vregs).
    heads = []
    for h in range(num_heads):
        sl = slice(h * d, (h + 1) * d)
        qh, kh, vh = q[:, sl], k[:, sl], v[:, sl]          # (L, d)
        s = jnp.dot(qh, kh.T, preferred_element_type=jnp.float32)  # (L, L)
        s = s - jnp.max(s, axis=-1, keepdims=True)
        p = jnp.exp(s)
        p = p / jnp.sum(p, axis=-1, keepdims=True)
        heads.append(jnp.dot(p, vh, preferred_element_type=jnp.float32))
    attn = jnp.concatenate(heads, axis=-1)                 # (L, C)

    # Output projection + residual.
    out = jnp.dot(attn, wo_ref[...],
                  preferred_element_type=jnp.float32) + bo_ref[...]
    x1 = x + out

    # fc2(fc1(x1)) + x1   (no nonlinearity in the reference module)
    h1 = jnp.dot(x1, w1_ref[...], preferred_element_type=jnp.float32)
    y = jnp.dot(h1, w2_ref[...], preferred_element_type=jnp.float32) + x1

    o_ref[0] = y.astype(o_ref.dtype)


# ----------------------------- wrapper --------------------------------------

def transformer_layer_forward(x_lnc, params, *, num_heads):
    """x_lnc: (L, N, C) float32 (PyTorch seq-first layout). Returns (L, N, C)."""
    L, N, C = x_lnc.shape
    d = C // num_heads
    scale = 1.0 / math.sqrt(d)

    Wq, Wk, Wv = params["wq"], params["wk"], params["wv"]      # (C, C), y = x @ W.T
    Wi, bi = params["in_proj_w"], params["in_proj_b"]          # (3C, C), (3C,)
    Wo, bo = params["out_proj_w"], params["out_proj_b"]        # (C, C), (C,)
    W1, W2 = params["fc1"], params["fc2"]                      # (C, C)

    # Fold self.q/k/v into the MHA in-projection:
    #   (x @ Wq.T) @ Wiq.T  ==  x @ (Wiq @ Wq).T
    # and fold the attention scale into the Q projection.
    Wiq, Wik, Wiv = Wi[:C], Wi[C:2 * C], Wi[2 * C:]
    biq, bik, biv = bi[:C], bi[C:2 * C], bi[2 * C:]
    wqkv = jnp.concatenate(
        [(Wiq @ Wq).T * scale, (Wik @ Wk).T, (Wiv @ Wv).T], axis=1)  # (C, 3C)
    bqkv = jnp.concatenate([biq * scale, bik, biv]).reshape(1, 3 * C)

    x_nlc = jnp.transpose(x_lnc, (1, 0, 2))                    # batch-major

    out = pl.pallas_call(
        functools.partial(_transformer_layer_kernel, num_heads=num_heads),
        out_shape=jax.ShapeDtypeStruct((N, L, C), jnp.float32),
        grid=(N,),
        in_specs=[
            pl.BlockSpec((1, L, C), lambda n: (n, 0, 0)),
            pl.BlockSpec((C, 3 * C), lambda n: (0, 0)),
            pl.BlockSpec((1, 3 * C), lambda n: (0, 0)),
            pl.BlockSpec((C, C), lambda n: (0, 0)),
            pl.BlockSpec((1, C), lambda n: (0, 0)),
            pl.BlockSpec((C, C), lambda n: (0, 0)),
            pl.BlockSpec((C, C), lambda n: (0, 0)),
        ],
        out_specs=pl.BlockSpec((1, L, C), lambda n: (n, 0, 0)),
        compiler_params=pltpu.CompilerParams(
            dimension_semantics=("parallel",)),
    )(x_nlc, wqkv, bqkv, Wo.T, bo.reshape(1, C), W1.T, W2.T)

    return jnp.transpose(out, (1, 0, 2))                       # back to (L, N, C)


# ----------------------------- pure-JAX reference ----------------------------

def transformer_layer_reference(x, p, *, num_heads):
    """Mirror of the PyTorch module (nn.MultiheadAttention defaults)."""
    L, N, C = x.shape
    d = C // num_heads
    q = x @ p["wq"].T
    k = x @ p["wk"].T
    v = x @ p["wv"].T
    Wi, bi = p["in_proj_w"], p["in_proj_b"]
    q = q @ Wi[:C].T + bi[:C]
    k = k @ Wi[C:2 * C].T + bi[C:2 * C]
    v = v @ Wi[2 * C:].T + bi[2 * C:]

    def split(t):  # (L, N, C) -> (N, H, L, d), PyTorch head ordering
        return jnp.transpose(t.reshape(L, N, num_heads, d), (1, 2, 0, 3))

    qh, kh, vh = split(q), split(k), split(v)
    scores = jnp.einsum("nhld,nhmd->nhlm", qh, kh) / math.sqrt(d)
    probs = jax.nn.softmax(scores, axis=-1)
    attn = jnp.einsum("nhlm,nhmd->nhld", probs, vh)
    attn = jnp.transpose(attn, (2, 0, 1, 3)).reshape(L, N, C)
    out = attn @ p["out_proj_w"].T + p["out_proj_b"]
    x1 = x + out
    return (x1 @ p["fc1"].T) @ p["fc2"].T + x1


# ----------------------------- params ----------------------------------------

def init_params(key, c):
    ks = jax.random.split(key, 9)
    s = 1.0 / math.sqrt(c)
    return {
        "wq": s * jax.random.normal(ks[0], (c, c), jnp.float32),
        "wk": s * jax.random.normal(ks[1], (c, c), jnp.float32),
        "wv": s * jax.random.normal(ks[2], (c, c), jnp.float32),
        "in_proj_w": s * jax.random.normal(ks[3], (3 * c, c), jnp.float32),
        "in_proj_b": 0.05 * jax.random.normal(ks[4], (3 * c,), jnp.float32),
        "out_proj_w": s * jax.random.normal(ks[5], (c, c), jnp.float32),
        "out_proj_b": 0.05 * jax.random.normal(ks[6], (c,), jnp.float32),
        "fc1": s * jax.random.normal(ks[7], (c, c), jnp.float32),
        "fc2": s * jax.random.normal(ks[8], (c, c), jnp.float32),
    }


# ----------------------------- main ------------------------------------------

if __name__ == "__main__":
    key = jax.random.PRNGKey(0)
    k_x, k_p = jax.random.split(key)

    L, N, C, NUM_HEADS = 8, 2, 32, 4           # seq=8, batch=2, c=32, heads=4
    x = jax.random.normal(k_x, (L, N, C), jnp.float32)   # (seq, batch, embed)
    params = init_params(k_p, C)

    fwd = jax.jit(functools.partial(transformer_layer_forward,
                                    num_heads=NUM_HEADS))
    out = jax.block_until_ready(fwd(x, params))

    ref = transformer_layer_reference(x, params, num_heads=NUM_HEADS)
    assert out.shape == (L, N, C)
    assert jnp.allclose(out, ref, atol=1e-4, rtol=1e-4), "mismatch vs reference"

    print("KERNEL_OK")
</pallas_src>

<mosaic_0001>
module attributes {stable_mosaic.version = 11 : i64} {
  func.func @_transformer_layer_kernel(%arg0: i32, %arg1: memref<1x8x32xf32, #tpu.memory_space<vmem>>, %arg2: memref<32x96xf32, #tpu.memory_space<vmem>>, %arg3: memref<1x96xf32, #tpu.memory_space<vmem>>, %arg4: memref<32x32xf32, #tpu.memory_space<vmem>>, %arg5: memref<1x32xf32, #tpu.memory_space<vmem>>, %arg6: memref<32x32xf32, #tpu.memory_space<vmem>>, %arg7: memref<32x32xf32, #tpu.memory_space<vmem>>, %arg8: memref<1x8x32xf32, #tpu.memory_space<vmem>>) attributes {dimension_semantics = [#tpu.dimension_semantics<parallel>], iteration_bounds = array<i64: 2>, scalar_prefetch = 0 : i64, scratch_operands = 0 : i64, tpu.core_type = #tpu.core_type<tc>, window_params = [{transform_indices = @transform_0, window_bounds = array<i64: 1, 8, 32>}, {pipeline_mode = #tpu.pipeline_mode<synchronous>, transform_indices = @transform_1, window_bounds = array<i64: 32, 96>}, {pipeline_mode = #tpu.pipeline_mode<synchronous>, transform_indices = @transform_2, window_bounds = array<i64: 1, 96>}, {pipeline_mode = #tpu.pipeline_mode<synchronous>, transform_indices = @transform_3, window_bounds = array<i64: 32, 32>}, {pipeline_mode = #tpu.pipeline_mode<synchronous>, transform_indices = @transform_4, window_bounds = array<i64: 1, 32>}, {pipeline_mode = #tpu.pipeline_mode<synchronous>, transform_indices = @transform_5, window_bounds = array<i64: 32, 32>}, {pipeline_mode = #tpu.pipeline_mode<synchronous>, transform_indices = @transform_6, window_bounds = array<i64: 32, 32>}, {transform_indices = @transform_7, window_bounds = array<i64: 1, 8, 32>}]} {
    %c0 = arith.constant 0 : index
    %c0_0 = arith.constant 0 : index
    %c0_1 = arith.constant 0 : index
    %0 = vector.load %arg1[%c0, %c0_0, %c0_1] : memref<1x8x32xf32, #tpu.memory_space<vmem>>, vector<1x8x32xf32>
    %1 = vector.shape_cast %0 : vector<1x8x32xf32> to vector<8x32xf32>
    %c0_2 = arith.constant 0 : index
    %c0_3 = arith.constant 0 : index
    %2 = vector.load %arg2[%c0_2, %c0_3] : memref<32x96xf32, #tpu.memory_space<vmem>>, vector<32x96xf32>
    %cst = arith.constant dense<0.000000e+00> : vector<8x96xf32>
    %3 = tpu.matmul %1, %2, %cst {dimension_numbers = #tpu.dot_dimension_numbers<[1], [0], [0], [1], [0, 0, 1, 1], [], []>} : vector<8x32xf32>, vector<32x96xf32>, vector<8x96xf32> -> vector<8x96xf32>
    %c0_4 = arith.constant 0 : index
    %c0_5 = arith.constant 0 : index
    %4 = vector.load %arg3[%c0_4, %c0_5] : memref<1x96xf32, #tpu.memory_space<vmem>>, vector<1x96xf32>
    %5 = vector.broadcast %4 : vector<1x96xf32> to vector<8x96xf32>
    %6 = arith.addf %3, %5 : vector<8x96xf32>
    %7 = vector.extract_strided_slice %6 {offsets = [0, 0], sizes = [8, 32], strides = [1, 1]} : vector<8x96xf32> to vector<8x32xf32>
    %8 = vector.extract_strided_slice %6 {offsets = [0, 32], sizes = [8, 32], strides = [1, 1]} : vector<8x96xf32> to vector<8x32xf32>
    %9 = vector.extract_strided_slice %6 {offsets = [0, 64], sizes = [8, 32], strides = [1, 1]} : vector<8x96xf32> to vector<8x32xf32>
    %10 = vector.extract_strided_slice %7 {offsets = [0, 0], sizes = [8, 8], strides = [1, 1]} : vector<8x32xf32> to vector<8x8xf32>
    %11 = vector.extract_strided_slice %8 {offsets = [0, 0], sizes = [8, 8], strides = [1, 1]} : vector<8x32xf32> to vector<8x8xf32>
    %12 = vector.extract_strided_slice %9 {offsets = [0, 0], sizes = [8, 8], strides = [1, 1]} : vector<8x32xf32> to vector<8x8xf32>
    %13 = tpu.transpose %11, [1, 0] : vector<8x8xf32> -> vector<8x8xf32>
    %cst_6 = arith.constant dense<0.000000e+00> : vector<8x8xf32>
    %14 = tpu.matmul %10, %13, %cst_6 {dimension_numbers = #tpu.dot_dimension_numbers<[1], [0], [0], [1], [0, 0, 1, 1], [], []>} : vector<8x8xf32>, vector<8x8xf32>, vector<8x8xf32> -> vector<8x8xf32>
    %cst_7 = arith.constant dense<0xFF800000> : vector<8xf32>
    %15 = vector.multi_reduction <maximumf>, %14, %cst_7 [1] : vector<8x8xf32> to vector<8xf32>
    %16 = vector.shape_cast %15 : vector<8xf32> to vector<8x1xf32>
    %17 = vector.broadcast %16 : vector<8x1xf32> to vector<8x8xf32>
    %18 = arith.subf %14, %17 : vector<8x8xf32>
    %19 = math.exp %18 : vector<8x8xf32>
    %cst_8 = arith.constant dense<0.000000e+00> : vector<8xf32>
    %20 = vector.multi_reduction <add>, %19, %cst_8 [1] : vector<8x8xf32> to vector<8xf32>
    %21 = vector.shape_cast %20 : vector<8xf32> to vector<8x1xf32>
    %22 = vector.broadcast %21 : vector<8x1xf32> to vector<8x8xf32>
    %23 = arith.divf %19, %22 : vector<8x8xf32>
    %cst_9 = arith.constant dense<0.000000e+00> : vector<8x8xf32>
    %24 = tpu.matmul %23, %12, %cst_9 {dimension_numbers = #tpu.dot_dimension_numbers<[1], [0], [0], [1], [0, 0, 1, 1], [], []>} : vector<8x8xf32>, vector<8x8xf32>, vector<8x8xf32> -> vector<8x8xf32>
    %25 = vector.extract_strided_slice %7 {offsets = [0, 8], sizes = [8, 8], strides = [1, 1]} : vector<8x32xf32> to vector<8x8xf32>
    %26 = vector.extract_strided_slice %8 {offsets = [0, 8], sizes = [8, 8], strides = [1, 1]} : vector<8x32xf32> to vector<8x8xf32>
    %27 = vector.extract_strided_slice %9 {offsets = [0, 8], sizes = [8, 8], strides = [1, 1]} : vector<8x32xf32> to vector<8x8xf32>
    %28 = tpu.transpose %26, [1, 0] : vector<8x8xf32> -> vector<8x8xf32>
    %cst_10 = arith.constant dense<0.000000e+00> : vector<8x8xf32>
    %29 = tpu.matmul %25, %28, %cst_10 {dimension_numbers = #tpu.dot_dimension_numbers<[1], [0], [0], [1], [0, 0, 1, 1], [], []>} : vector<8x8xf32>, vector<8x8xf32>, vector<8x8xf32> -> vector<8x8xf32>
    %cst_11 = arith.constant dense<0xFF800000> : vector<8xf32>
    %30 = vector.multi_reduction <maximumf>, %29, %cst_11 [1] : vector<8x8xf32> to vector<8xf32>
    %31 = vector.shape_cast %30 : vector<8xf32> to vector<8x1xf32>
    %32 = vector.broadcast %31 : vector<8x1xf32> to vector<8x8xf32>
    %33 = arith.subf %29, %32 : vector<8x8xf32>
    %34 = math.exp %33 : vector<8x8xf32>
    %cst_12 = arith.constant dense<0.000000e+00> : vector<8xf32>
    %35 = vector.multi_reduction <add>, %34, %cst_12 [1] : vector<8x8xf32> to vector<8xf32>
    %36 = vector.shape_cast %35 : vector<8xf32> to vector<8x1xf32>
    %37 = vector.broadcast %36 : vector<8x1xf32> to vector<8x8xf32>
    %38 = arith.divf %34, %37 : vector<8x8xf32>
    %cst_13 = arith.constant dense<0.000000e+00> : vector<8x8xf32>
    %39 = tpu.matmul %38, %27, %cst_13 {dimension_numbers = #tpu.dot_dimension_numbers<[1], [0], [0], [1], [0, 0, 1, 1], [], []>} : vector<8x8xf32>, vector<8x8xf32>, vector<8x8xf32> -> vector<8x8xf32>
    %40 = vector.extract_strided_slice %7 {offsets = [0, 16], sizes = [8, 8], strides = [1, 1]} : vector<8x32xf32> to vector<8x8xf32>
    %41 = vector.extract_strided_slice %8 {offsets = [0, 16], sizes = [8, 8], strides = [1, 1]} : vector<8x32xf32> to vector<8x8xf32>
    %42 = vector.extract_strided_slice %9 {offsets = [0, 16], sizes = [8, 8], strides = [1, 1]} : vector<8x32xf32> to vector<8x8xf32>
    %43 = tpu.transpose %41, [1, 0] : vector<8x8xf32> -> vector<8x8xf32>
    %cst_14 = arith.constant dense<0.000000e+00> : vector<8x8xf32>
    %44 = tpu.matmul %40, %43, %cst_14 {dimension_numbers = #tpu.dot_dimension_numbers<[1], [0], [0], [1], [0, 0, 1, 1], [], []>} : vector<8x8xf32>, vector<8x8xf32>, vector<8x8xf32> -> vector<8x8xf32>
    %cst_15 = arith.constant dense<0xFF800000> : vector<8xf32>
    %45 = vector.multi_reduction <maximumf>, %44, %cst_15 [1] : vector<8x8xf32> to vector<8xf32>
    %46 = vector.shape_cast %45 : vector<8xf32> to vector<8x1xf32>
    %47 = vector.broadcast %46 : vector<8x1xf32> to vector<8x8xf32>
    %48 = arith.subf %44, %47 : vector<8x8xf32>
    %49 = math.exp %48 : vector<8x8xf32>
    %cst_16 = arith.constant dense<0.000000e+00> : vector<8xf32>
    %50 = vector.multi_reduction <add>, %49, %cst_16 [1] : vector<8x8xf32> to vector<8xf32>
    %51 = vector.shape_cast %50 : vector<8xf32> to vector<8x1xf32>
    %52 = vector.broadcast %51 : vector<8x1xf32> to vector<8x8xf32>
    %53 = arith.divf %49, %52 : vector<8x8xf32>
    %cst_17 = arith.constant dense<0.000000e+00> : vector<8x8xf32>
    %54 = tpu.matmul %53, %42, %cst_17 {dimension_numbers = #tpu.dot_dimension_numbers<[1], [0], [0], [1], [0, 0, 1, 1], [], []>} : vector<8x8xf32>, vector<8x8xf32>, vector<8x8xf32> -> vector<8x8xf32>
    %55 = vector.extract_strided_slice %7 {offsets = [0, 24], sizes = [8, 8], strides = [1, 1]} : vector<8x32xf32> to vector<8x8xf32>
    %56 = vector.extract_strided_slice %8 {offsets = [0, 24], sizes = [8, 8], strides = [1, 1]} : vector<8x32xf32> to vector<8x8xf32>
    %57 = vector.extract_strided_slice %9 {offsets = [0, 24], sizes = [8, 8], strides = [1, 1]} : vector<8x32xf32> to vector<8x8xf32>
    %58 = tpu.transpose %56, [1, 0] : vector<8x8xf32> -> vector<8x8xf32>
    %cst_18 = arith.constant dense<0.000000e+00> : vector<8x8xf32>
    %59 = tpu.matmul %55, %58, %cst_18 {dimension_numbers = #tpu.dot_dimension_numbers<[1], [0], [0], [1], [0, 0, 1, 1], [], []>} : vector<8x8xf32>, vector<8x8xf32>, vector<8x8xf32> -> vector<8x8xf32>
    %cst_19 = arith.constant dense<0xFF800000> : vector<8xf32>
    %60 = vector.multi_reduction <maximumf>, %59, %cst_19 [1] : vector<8x8xf32> to vector<8xf32>
    %61 = vector.shape_cast %60 : vector<8xf32> to vector<8x1xf32>
    %62 = vector.broadcast %61 : vector<8x1xf32> to vector<8x8xf32>
    %63 = arith.subf %59, %62 : vector<8x8xf32>
    %64 = math.exp %63 : vector<8x8xf32>
    %cst_20 = arith.constant dense<0.000000e+00> : vector<8xf32>
    %65 = vector.multi_reduction <add>, %64, %cst_20 [1] : vector<8x8xf32> to vector<8xf32>
    %66 = vector.shape_cast %65 : vector<8xf32> to vector<8x1xf32>
    %67 = vector.broadcast %66 : vector<8x1xf32> to vector<8x8xf32>
    %68 = arith.divf %64, %67 : vector<8x8xf32>
    %cst_21 = arith.constant dense<0.000000e+00> : vector<8x8xf32>
    %69 = tpu.matmul %68, %57, %cst_21 {dimension_numbers = #tpu.dot_dimension_numbers<[1], [0], [0], [1], [0, 0, 1, 1], [], []>} : vector<8x8xf32>, vector<8x8xf32>, vector<8x8xf32> -> vector<8x8xf32>
    %70 = tpu.concatenate %24, %39, %54, %69 in 1 : vector<8x8xf32>, vector<8x8xf32>, vector<8x8xf32>, vector<8x8xf32> -> vector<8x32xf32>
    %c0_22 = arith.constant 0 : index
    %c0_23 = arith.constant 0 : index
    %71 = vector.load %arg4[%c0_22, %c0_23] : memref<32x32xf32, #tpu.memory_space<vmem>>, vector<32x32xf32>
    %cst_24 = arith.constant dense<0.000000e+00> : vector<8x32xf32>
    %72 = tpu.matmul %70, %71, %cst_24 {dimension_numbers = #tpu.dot_dimension_numbers<[1], [0], [0], [1], [0, 0, 1, 1], [], []>} : vector<8x32xf32>, vector<32x32xf32>, vector<8x32xf32> -> vector<8x32xf32>
    %c0_25 = arith.constant 0 : index
    %c0_26 = arith.constant 0 : index
    %73 = vector.load %arg5[%c0_25, %c0_26] : memref<1x32xf32, #tpu.memory_space<vmem>>, vector<1x32xf32>
    %74 = vector.broadcast %73 : vector<1x32xf32> to vector<8x32xf32>
    %75 = arith.addf %72, %74 : vector<8x32xf32>
    %76 = arith.addf %1, %75 : vector<8x32xf32>
    %c0_27 = arith.constant 0 : index
    %c0_28 = arith.constant 0 : index
    %77 = vector.load %arg6[%c0_27, %c0_28] : memref<32x32xf32, #tpu.memory_space<vmem>>, vector<32x32xf32>
    %cst_29 = arith.constant dense<0.000000e+00> : vector<8x32xf32>
    %78 = tpu.matmul %76, %77, %cst_29 {dimension_numbers = #tpu.dot_dimension_numbers<[1], [0], [0], [1], [0, 0, 1, 1], [], []>} : vector<8x32xf32>, vector<32x32xf32>, vector<8x32xf32> -> vector<8x32xf32>
    %c0_30 = arith.constant 0 : index
    %c0_31 = arith.constant 0 : index
    %79 = vector.load %arg7[%c0_30, %c0_31] : memref<32x32xf32, #tpu.memory_space<vmem>>, vector<32x32xf32>
    %cst_32 = arith.constant dense<0.000000e+00> : vector<8x32xf32>
    %80 = tpu.matmul %78, %79, %cst_32 {dimension_numbers = #tpu.dot_dimension_numbers<[1], [0], [0], [1], [0, 0, 1, 1], [], []>} : vector<8x32xf32>, vector<32x32xf32>, vector<8x32xf32> -> vector<8x32xf32>
    %81 = arith.addf %80, %76 : vector<8x32xf32>
    %c0_33 = arith.constant 0 : index
    %c0_34 = arith.constant 0 : index
    %c0_35 = arith.constant 0 : index
    %82 = vector.load %arg8[%c0_33, %c0_34, %c0_35] : memref<1x8x32xf32, #tpu.memory_space<vmem>>, vector<1x8x32xf32>
    %83 = vector.shape_cast %82 : vector<1x8x32xf32> to vector<8x32xf32>
    %84 = vector.shape_cast %81 : vector<8x32xf32> to vector<1x8x32xf32>
    tpu.vector_store %arg8[%c0_33, %c0_34, %c0_35], %84 {strides = array<i32>} : memref<1x8x32xf32, #tpu.memory_space<vmem>>, vector<1x8x32xf32>,
    return
  }
  func.func @transform_0(%arg0: i32) -> (i32, i32, i32) {
    %c0_i32 = arith.constant 0 : i32
    %c0_i32_0 = arith.constant 0 : i32
    %c0_i32_1 = arith.constant 0 : i32
    return %arg0, %c0_i32, %c0_i32_0 : i32, i32, i32
  }
  func.func @transform_1(%arg0: i32) -> (i32, i32) {
    %c0_i32 = arith.constant 0 : i32
    %c0_i32_0 = arith.constant 0 : i32
    %c0_i32_1 = arith.constant 0 : i32
    return %c0_i32, %c0_i32_0 : i32, i32
  }
  func.func @transform_2(%arg0: i32) -> (i32, i32) {
    %c0_i32 = arith.constant 0 : i32
    %c0_i32_0 = arith.constant 0 : i32
    %c0_i32_1 = arith.constant 0 : i32
    return %c0_i32, %c0_i32_0 : i32, i32
  }
  func.func @transform_3(%arg0: i32) -> (i32, i32) {
    %c0_i32 = arith.constant 0 : i32
    %c0_i32_0 = arith.constant 0 : i32
    %c0_i32_1 = arith.constant 0 : i32
    return %c0_i32, %c0_i32_0 : i32, i32
  }
  func.func @transform_4(%arg0: i32) -> (i32, i32) {
    %c0_i32 = arith.constant 0 : i32
    %c0_i32_0 = arith.constant 0 : i32
    %c0_i32_1 = arith.constant 0 : i32
    return %c0_i32, %c0_i32_0 : i32, i32
  }
  func.func @transform_5(%arg0: i32) -> (i32, i32) {
    %c0_i32 = arith.constant 0 : i32
    %c0_i32_0 = arith.constant 0 : i32
    %c0_i32_1 = arith.constant 0 : i32
    return %c0_i32, %c0_i32_0 : i32, i32
  }
  func.func @transform_6(%arg0: i32) -> (i32, i32) {
    %c0_i32 = arith.constant 0 : i32
    %c0_i32_0 = arith.constant 0 : i32
    %c0_i32_1 = arith.constant 0 : i32
    return %c0_i32, %c0_i32_0 : i32, i32
  }
  func.func @transform_7(%arg0: i32) -> (i32, i32, i32) {
    %c0_i32 = arith.constant 0 : i32
    %c0_i32_0 = arith.constant 0 : i32
    %c0_i32_1 = arith.constant 0 : i32
    return %arg0, %c0_i32, %c0_i32_0 : i32, i32, i32
  }
}

</mosaic_0001>

<bundles_post_ra>
// kernel: transformer_layer_forward.1
= control target key start
LH: loop header
LB: loop body
LE: loop exit
PB: predicated region body
PF: predicated region fallthrough
CT: control target
= control target key end

     0   :  { %s1607_s24 = smov 0   ;;  %s1772_s0 = inlined_call_operand.vmem [shape: f32[2,8,32], index: 0, kind: input, shape index: {}]   ;;  %s1773_s1 = inlined_call_operand.vmem [shape: f32[32,96], index: 1, kind: input, shape index: {}]   ;;  %s1774_s2 = inlined_call_operand.vmem [shape: f32[1,96], index: 2, kind: input, shape index: {}]   ;;  %s1775_s3 = inlined_call_operand.vmem [shape: f32[32,32], index: 3, kind: input, shape index: {}]   ;;  %s1776_s4 = inlined_call_operand.vmem [shape: f32[1,32], index: 4, kind: input, shape index: {}]   ;;  %s1777_s5 = inlined_call_operand.vmem [shape: f32[32,32], index: 5, kind: input, shape index: {}]   ;;  %s1778_s6 = inlined_call_operand.vmem [shape: f32[32,32], index: 6, kind: input, shape index: {}]   ;;  %s1779_s7 = inlined_call_operand.vmem [shape: f32[2,8,32], index: 7, kind: output, shape index: {}]  }
   0x1 LB: > { %s1330_s25 = sadd.s32 4294967295, %s1548_s24   ;;  %p1334_p0 = scmp.ge.s32.totalorder %s1548_s24, 1  ;;  %s1548_s24 = sphi %s1607_s24, %s17_s24  }
   0x2   : > { %p236_p1 = scmp.lt.s32.totalorder %s1548_s24, 3 }
   0x4   : > { %p237_p2 = pnand %p1334_p0, %p236_p1 }
   0x5   : > { %v275_v0 = vld [vmem:[%s1773_s1] sm:$0xff] (!%p237_p2)  ;;  %v276_v1 = vld [vmem:[%s1773_s1 + $0x8] sm:$0xff] (!%p237_p2)  ;;  %v277_v2 = vld [vmem:[%s1773_s1 + $0x10] sm:$0xff] (!%p237_p2)  ;;  %v1550_v3 = vmov (!%p237_p2), 0.0|0.0   ;;  %vm1551_vm0 = vmmov (!%p237_p2), 0   ;;  %v1552_v6 = vmov (!%p237_p2), 0.0  }
   0x6   : > { %240 = sbr.rel (%p237_p2) target bundleno = 2424 (0x978), region = 48  ;;  %1477 = vmatprep.subr.bf16.mxu0 (!%p237_p2), %v1550_v3  ;;  %v1478_v4 = vpack.c.bf16 (!%p237_p2), %v276_v1, %v275_v0  ;;  %v278_v5 = vld [vmem:[%s1773_s1 + $0x18] sm:$0xff] (!%p237_p2)  ;;  %1401 = vmatprep.mubr.msk.f32.mxu0 (!%p237_p2), %vm1551_vm0, %v1552_v6  ;;  %p266_p3 = scmp.lt.s32.totalorder (!%p237_p2), %s1330_s25, 1  ;;  %vm286_vm1 = vcmask (!%p237_p2), 261120   ;;  %v1337_v9 = vld [vmem:[%s1774_s2] ss:$0 sm:$0xff] (!%p237_p2) }
   0x7   : > { %1404 = vmatprep.subr.mxu1 (!%p237_p2), %v1552_v6  ;;  %1406 = vmatprep.mubr.msk.f32.mxu1 (!%p237_p2), %vm1551_vm0, %v1552_v6  ;;  %v1481_v7 = vpack.c.bf16 (!%p237_p2), %v278_v5, %v277_v2  ;;  %s1553_s17 = smov (!%p237_p2), 64   ;;  %s1554_s18 = smov (!%p237_p2), 96   ;;  %vm363_vm2 = vcmask (!%p237_p2), 64512   ;;  %vm1033_vm3 = vcmask (!%p237_p2), 130048   ;;  %vm1035_vm4 = vcmask (!%p237_p2), 195584  }
   0x8   : > { %1479 = vmatpush3.bf16.msra.mxu0 (!%p237_p2), %v1478_v4  ;;  %s1555_s19 = smov (!%p237_p2), 88   ;;  %s1556_s20 = smov (!%p237_p2), 120  }
   0x9   : > { %1480 = vmatprep.subr.bf16.mxu0 (!%p237_p2), %v1550_v3  ;;  %s1557_s21 = smov (!%p237_p2), 80   ;;  %s1558_s22 = smov (!%p237_p2), 72  }
   0xa   : > { %s1559_s23 = smov (!%p237_p2), 112   ;;  %s1560_s26 = smov (!%p237_p2), 104  }
   0xb   : > { %s1561_s27 = smov (!%p237_p2), 56   ;;  %s1562_s28 = smov (!%p237_p2), 48  }
   0xc   : > { %1482 = vmatpush3.bf16.msra.mxu0 (!%p237_p2), %v1481_v7  ;;  %s1563_s29 = smov (!%p237_p2), 40  }
   0xd   : > { %s1781_s25 = smov (!%p266_p3, %s1330_s25), 1  ;;  %1424 = vmatprep.subr.mxu0 %v1552_v6 }
   0xe   : > { %s1335_s11 = sshll.u32 %s1781_s25, 3 }
   0xf   : > { %s269_s14 = scalar_lea.vmem %s1772_s0, %s1335_s11 }
  0x10   : > { %v1642_v8 = vld [vmem:[%s269_s14] sm:$0xff] }
  0x11   : > { %1402 = vmatmul.mubr.msk.f32.vlgmr.msra.gmra.mrb[0].mxu0 %vm286_vm1, %v1642_v8 }
  0x12   : > { %1426 = vmatprep.mubr.msk.f32.mxu0 %vm1551_vm0, %v1552_v6 }
  0xe4   : > { %v356_v10 = vpop.f32.mrb[0].mxu0 }
  0xe5   : > { %v1652_v11 = vadd.f32 %v1337_v9, %v356_v10  ;;  %v1403_v12 = vpop.f32.mrb[1].mxu0  ;;  %v1037_v9 = vld [vmem:[%s1775_s3] sm:$0xff]  ;;  %v1038_v10 = vld [vmem:[%s1775_s3 + $0x8] sm:$0xff] }
  0xe6   : > { %v1039_v12 = vld [vmem:[%s1775_s3 + $0x10] sm:$0xff] }
  0xe7   : > { %449 = vrot.lane.b32.xlu1 %v1652_v11, %s1553_s17  ;;  %361 = vrot.lane.b32.xlu0 %v1652_v11, %s1554_s18 }
  0xeb   : > { %527 = vrot.lane.b32.xlu1 %v1652_v11, %s1555_s19  ;;  %s273_s19 = scalar_lea.vmem %s1779_s7, %s1335_s11 }
  0xef   : > { %525 = vrot.lane.b32.xlu1 %v1652_v11, %s1556_s20  ;;  %s1564_s20 = smov 8  }
  0xf3   : > { %692 = vrot.lane.b32.xlu1 %v1652_v11, %s1557_s21  ;;  %s1565_s21 = smov 16  }
 0x159   : > { %v450_v13 = vpop.permute.xlu1 %449  ;;  %v362_v14 = vpop.permute.xlu0 %361 }
 0x15a   : > { %1405 = vmatpush3.xpose.msk.msra.mxu1 %vm363_vm2, %v362_v14 }
 0x15b   : > { %1409 = vmatprep.subr.mxu1 %v1552_v6 }
 0x15d   : > { %v528_v15 = vpop.permute.xlu1 %527  ;;  %1407 = vmatmul.mubr.msk.f32.vlgmr.msra.gmra.mrb[0].mxu1 %vm363_vm2, %v1652_v11 }
 0x15e   : > { %1410 = vmatpush3.msra.mxu1 %v450_v13  ;;  %1411 = vmatprep.mubr.msk.f32.mxu1 %vm1551_vm0, %v1552_v6  ;;  %v1040_v13 = vld [vmem:[%s1775_s3 + $0x18] sm:$0xff] }
 0x15f   : > { %1414 = vmatprep.subr.mxu1 %v1552_v6  ;;  %v1487_v14 = vpack.c.bf16 %v1040_v13, %v1039_v12 }
 0x161   : > { %v526_v16 = vpop.permute.xlu1 %525 }
 0x165   : > { %v693_v17 = vpop.permute.xlu1 %692 }
 0x166   : > { %1425 = vmatpush3.xpose.msk.msra.mxu0 %vm363_vm2, %v693_v17 }
 0x167   : > { %1434 = vmatprep.subr.mxu0 %v1552_v6 }
 0x230   : > { %v434_v18 = vpop.f32.mrb[0].mxu1 }
 0x231   : > { %v1408_v19 = vpop.f32.mrb[1].mxu1  ;;  %v438_v20 = vsel %vm363_vm2, %v434_v18, -inf }
 0x232   : > { %439 = vmax.xlane.f32.xlu0 %v438_v20 }
 0x248   : > { %857 = vrot.lane.b32.xlu0 %v1652_v11, %s1558_s22  ;;  %s1566_s22 = smov 24  }
 0x2bf   : > { %v440_v21 = vpop.xlane.xlu0 %439 }
 0x2c0   : > { %v441_v22 = vsub.f32 %v434_v18, %v440_v21 }
 0x2c2   : > { %v442_v23 = vmul.f32 1.442695, %v441_v22 }
 0x2c3   : > { %v858_v28 = vpop.permute.xlu0 %857 }
 0x2c4   : > { %1526 = vpow2.f32 %v442_v23 }
 0x2ce   : > { %v1527_v24 = vpop.eup %1526 }
 0x2cf   : > { %v444_v25 = vsel %vm363_vm2, %v1527_v24, 0.0 }
 0x2d0   : > { %445 = vadd.xlane.f32.xlu1 %v444_v25 }
 0x2e1   : > { %690 = vrot.lane.b32.xlu1 %v1652_v11, %s1559_s23 }
 0x2e5   : > { %855 = vrot.lane.b32.xlu1 %v1652_v11, %s1560_s26 }
 0x35d   : > { %v446_v26 = vpop.xlane.xlu1 %445 }
 0x35e   : > { %1528 = vrcp.f32 %v446_v26 }
 0x361   : > { %v691_v27 = vpop.permute.xlu1 %690 }
 0x362   : > { %1427 = vmatmul.mubr.msk.f32.vlgmr.msra.gmra.mrb[2].mxu0 %vm363_vm2, %v691_v27 }
 0x363   : > { %1435 = vmatpush3.xpose.msk.msra.mxu0 %vm363_vm2, %v858_v28  ;;  %1436 = vmatprep.mubr.msk.f32.mxu0 %vm1551_vm0, %v1552_v6 }
 0x364   : > { %1483 = vmatprep.subr.bf16.mxu0 %v1550_v3 }
 0x365   : > { %v856_v29 = vpop.permute.xlu1 %855 }
 0x366   : > { %1437 = vmatmul.mubr.msk.f32.vlgmr.msra.gmra.mrb[4].mxu0 %vm363_vm2, %v856_v29 }
 0x367   : > { %1452 = vmatprep.mubr.msk.f32.mxu0 %vm1551_vm0, %v1552_v6 }
 0x368   : > { %v1529_v30 = vpop.eup %1528 }
 0x369   : > { %v448_v31 = vmul.f32 %v1529_v30, %v1527_v24  ;;  %v1124_v30 = vld [vmem:[%s1777_s5 + $0x10] sm:$0xff] }
 0x36b   : > { %1412 = vmatmul.mubr.msk.f32.vlgmr.msra.gmra.mrb[2].mxu1 %vm363_vm2, %v448_v31  ;;  %v1125_v31 = vld [vmem:[%s1777_s5 + $0x18] sm:$0xff] }
 0x36c   : > { %1415 = vmatpush3.xpose.msk.msra.mxu1 %vm363_vm2, %v528_v15  ;;  %1416 = vmatprep.mubr.msk.f32.mxu1 %vm1551_vm0, %v1552_v6  ;;  %v1122_v15 = vld [vmem:[%s1777_s5] sm:$0xff] }
 0x36d   : > { %1419 = vmatprep.subr.mxu1 %v1552_v6 }
 0x36f   : > { %1417 = vmatmul.mubr.msk.f32.vlgmr.msra.gmra.mrb[4].mxu1 %vm363_vm2, %v526_v16  ;;  %v1123_v16 = vld [vmem:[%s1777_s5 + $0x8] sm:$0xff] }
 0x370   : > { %1421 = vmatprep.mubr.msk.f32.mxu1 %vm1551_vm0, %v1552_v6  ;;  %v1490_v17 = vpack.c.bf16 %v1123_v16, %v1122_v15 }
 0x435   : > { %v764_v32 = vpop.f32.mrb[2].mxu0 }
 0x436   : > { %v1428_v33 = vpop.f32.mrb[3].mxu0  ;;  %v768_v34 = vsel %vm363_vm2, %v764_v32, -inf }
 0x437   : > { %769 = vmax.xlane.f32.xlu0 %v768_v34  ;;  %v1199_v33 = vld [vmem:[%s1778_s6] sm:$0xff]  ;;  %v1200_v34 = vld [vmem:[%s1778_s6 + $0x8] sm:$0xff] }
 0x439   : > { %v929_v35 = vpop.f32.mrb[4].mxu0 }
 0x43a   : > { %v1438_v36 = vpop.f32.mrb[5].mxu0  ;;  %v933_v42 = vsel %vm363_vm2, %v929_v35, -inf }
 0x43b   : > { %v1202_v36 = vld [vmem:[%s1778_s6 + $0x18] sm:$0xff] }
 0x43e   : > { %v1690_v37 = vpop.f32.mrb[2].mxu1 }
 0x43f   : > { %v1413_v38 = vpop.f32.mrb[3].mxu1 }
 0x440   : > { %v1351_v38 = vld [vmem:[%s1776_s4] ss:$0 sm:$0xff] }
 0x442   : > { %v599_v39 = vpop.f32.mrb[4].mxu1 }
 0x443   : > { %v1418_v40 = vpop.f32.mrb[5].mxu1  ;;  %v603_v41 = vsel %vm363_vm2, %v599_v39, -inf }
 0x444   : > { %604 = vmax.xlane.f32.xlu1 %v603_v41 }
 0x448   : > { %934 = vmax.xlane.f32.xlu1 %v933_v42 }
 0x4c4   : > { %v770_v43 = vpop.xlane.xlu0 %769 }
 0x4c5   : > { %v771_v44 = vsub.f32 %v764_v32, %v770_v43  ;;  %v1493_v32 = vpack.c.bf16 %v1125_v31, %v1124_v30 }
 0x4c7   : > { %v772_v45 = vmul.f32 1.442695, %v771_v44 }
 0x4c9   : > { %1530 = vpow2.f32 %v772_v45 }
 0x4d1   : > { %v605_v46 = vpop.xlane.xlu1 %604 }
 0x4d2   : > { %v606_v54 = vsub.f32 %v599_v39, %v605_v46 }
 0x4d3   : > { %v1531_v47 = vpop.eup %1530 }
 0x4d4   : > { %v774_v48 = vsel %vm363_vm2, %v1531_v47, 0.0  ;;  %v607_v55 = vmul.f32 1.442695, %v606_v54 }
 0x4d5   : > { %775 = vadd.xlane.f32.xlu1 %v774_v48  ;;  %v935_v49 = vpop.xlane.xlu1 %934 }
 0x4d6   : > { %v936_v50 = vsub.f32 %v929_v35, %v935_v49  ;;  %v1496_v35 = vpack.c.bf16 %v1200_v34, %v1199_v33 }
 0x4d8   : > { %v937_v51 = vmul.f32 1.442695, %v936_v50 }
 0x4da   : > { %1532 = vpow2.f32 %v937_v51 }
 0x4db   : > { %1534 = vpow2.f32 %v607_v55 }
 0x4e4   : > { %v1533_v52 = vpop.eup %1532 }
 0x4e5   : > { %v939_v53 = vsel %vm363_vm2, %v1533_v52, 0.0  ;;  %v1535_v56 = vpop.eup %1534 }
 0x4e6   : > { %614 = vrot.lane.b32.xlu1 %v1652_v11, %s1561_s27  ;;  %940 = vadd.xlane.f32.xlu0 %v939_v53  ;;  %v609_v57 = vsel %vm363_vm2, %v1535_v56, 0.0 }
 0x4fc   : > { %779 = vrot.lane.b32.xlu0 %v1652_v11, %s1562_s28 }
 0x50a   : > { %610 = vadd.xlane.f32.xlu1 %v609_v57 }
 0x51b   : > { %944 = vrot.lane.b32.xlu1 %v1652_v11, %s1563_s29  ;;  %v1484_v11 = vpack.c.bf16 %v1038_v10, %v1037_v9 }
 0x51d   : > { %1485 = vmatpush3.bf16.msra.mxu0 %v1484_v11 }
 0x51e   : > { %1486 = vmatprep.subr.bf16.mxu0 %v1550_v3 }
 0x521   : > { %1488 = vmatpush3.bf16.msra.mxu0 %v1487_v14 }
 0x522   : > { %1495 = vmatprep.subr.bf16.mxu0 %v1550_v3 }
 0x562   : > { %v776_v58 = vpop.xlane.xlu1 %775 }
 0x566   : > { %v615_v59 = vpop.permute.xlu1 %614 }
 0x567   : > { %1420 = vmatpush3.msra.mxu1 %v615_v59 }
 0x568   : > { %1429 = vmatprep.subr.mxu1 %v1552_v6 }
 0x573   : > { %v941_v61 = vpop.xlane.xlu0 %940 }
 0x577   : > { %v780_v1 = vpop.permute.xlu0 %779 }
 0x597   : > { %v611_v60 = vpop.xlane.xlu1 %610 }
 0x598   : > { %1536 = vrcp.f32 %v611_v60 }
 0x599   : > { %1538 = vrcp.f32 %v776_v58 }
 0x59a   : > { %1540 = vrcp.f32 %v941_v61 }
 0x59b   : > { %v945_v5 = vpop.permute.xlu1 %944 }
 0x5a2   : > { %v1537_v62 = vpop.eup %1536 }
 0x5a3   : > { %v613_v63 = vmul.f32 %v1537_v62, %v1535_v56  ;;  %v1539_v0 = vpop.eup %1538 }
 0x5a4   : > { %v778_v2 = vmul.f32 %v1539_v0, %v1531_v47  ;;  %v1541_v4 = vpop.eup %1540 }
 0x5a5   : > { %1422 = vmatmul.mubr.msk.f32.vlgmr.msra.gmra.mrb[6].mxu1 %vm363_vm2, %v613_v63  ;;  %v943_v7 = vmul.f32 %v1541_v4, %v1533_v52 }
 0x5a6   : > { %1430 = vmatpush3.msra.mxu1 %v780_v1  ;;  %1431 = vmatprep.mubr.msk.f32.mxu1 %vm1551_vm0, %v1552_v6 }
 0x5a7   : > { %1439 = vmatprep.subr.mxu1 %v1552_v6 }
 0x5a9   : > { %1432 = vmatmul.mubr.msk.f32.vlgmr.msra.gmra.mrb[8].mxu1 %vm363_vm2, %v778_v2 }
 0x5aa   : > { %1440 = vmatpush3.msra.mxu1 %v945_v5  ;;  %1441 = vmatprep.mubr.msk.f32.mxu1 %vm1551_vm0, %v1552_v6 }
 0x5ab   : > { %1489 = vmatprep.subr.bf16.mxu1 %v1550_v3 }
 0x5ad   : > { %1442 = vmatmul.mubr.msk.f32.vlgmr.msra.gmra.mrb[10].mxu1 %vm363_vm2, %v943_v7 }
 0x5ae   : > { %1463 = vmatprep.mubr.msk.f32.mxu1 %vm1551_vm0, %v1552_v6  ;;  %1491 = vmatpush3.bf16.msra.mxu1 %v1490_v17 }
 0x5af   : > { %1492 = vmatprep.subr.bf16.mxu1 %v1550_v3 }
 0x5b2   : > { %1494 = vmatpush3.bf16.msra.mxu1 %v1493_v32 }
 0x678   : > { %v686_v18 = vpop.f32.mrb[6].mxu1 }
 0x679   : > { %1021 = vrot.lane.b32.xlu1 %v686_v18, %s1564_s20  ;;  %v1423_v19 = vpop.f32.mrb[7].mxu1 }
 0x67c   : > { %v851_v20 = vpop.f32.mrb[8].mxu1 }
 0x67d   : > { %1025 = vrot.lane.b32.xlu0 %v851_v20, %s1565_s21  ;;  %v1433_v21 = vpop.f32.mrb[9].mxu1 }
 0x680   : > { %v1016_v22 = vpop.f32.mrb[10].mxu1 }
 0x681   : > { %1029 = vrot.lane.b32.xlu1 %v1016_v22, %s1566_s22  ;;  %v1443_v23 = vpop.f32.mrb[11].mxu1 }
 0x6eb   : > { %v1022_v24 = vpop.permute.xlu1 %1021 }
 0x6ec   : > { %v1032_v26 = vsel %vm363_vm2, %v1690_v37, %v1022_v24 }
 0x6ef   : > { %v1026_v25 = vpop.permute.xlu0 %1025 }
 0x6f0   : > { %v1034_v27 = vsel %vm1033_vm3, %v1032_v26, %v1026_v25 }
 0x6f3   : > { %v1030_v28 = vpop.permute.xlu1 %1029 }
 0x6f4   : > { %v1036_v29 = vsel %vm1035_vm4, %v1034_v27, %v1030_v28 }
 0x6f5   : > { %1453 = vmatmul.mubr.msk.f32.vlgmr.msra.gmra.mrb[6].mxu0 %vm286_vm1, %v1036_v29 }
 0x6f6   : > { %1474 = vmatprep.mubr.msk.f32.mxu0 %vm1551_vm0, %v1552_v6  ;;  %v1201_v6 = vld [vmem:[%s1778_s6 + $0x10] sm:$0xff]  ;;  %1497 = vmatpush3.bf16.msra.mxu0 %v1496_v35 }
 0x6f7   : > { %v1499_v37 = vpack.c.bf16 %v1202_v36, %v1201_v6  ;;  %1498 = vmatprep.subr.bf16.mxu0 %v1550_v3 }
 0x6fa   : > { %1500 = vmatpush3.bf16.msra.mxu0 %v1499_v37 }
 0x7c8   : > { %v1117_v39 = vpop.f32.mrb[6].mxu0 }
 0x7c9   : > { %v1118_v40 = vadd.f32 %v1351_v38, %v1117_v39  ;;  %v1454_v41 = vpop.f32.mrb[7].mxu0 }
 0x7cb   : > { %v1121_v42 = vadd.f32 %v1118_v40, %v1642_v8 }
 0x7cd   : > { %1464 = vmatmul.mubr.msk.f32.vlgmr.msra.gmra.mrb[12].mxu1 %vm286_vm1, %v1121_v42 }
 0x8a0   : > { %v1195_v43 = vpop.f32.mrb[12].mxu1 }
 0x8a1   : > { %v1465_v44 = vpop.f32.mrb[13].mxu1  ;;  %1475 = vmatmul.mubr.msk.f32.vlgmr.msra.gmra.mrb[8].mxu0 %vm286_vm1, %v1195_v43 }
 0x974   : > { %v1272_v3 = vpop.f32.mrb[8].mxu0 }
 0x975   : > { %v1273_v45 = vadd.f32 %v1272_v3, %v1121_v42  ;;  %v1476_v46 = vpop.f32.mrb[9].mxu0 }
 0x977   : > { %1276 = vst.msk [vmem:[%s273_s19] sm:$0xff] %vm286_vm1, %v1273_v45 }
 0x978 PF: > { %s17_s24 = sadd.s32 1, %s1548_s24  }
 0x979   : > { %p14_p4 = scmp.ge.s32.totalorder %s17_s24, 4  }
 0x97b   :  { %16 = sbr.rel (!%p14_p4) target bundleno = 1 (0x1), region = 78 }

</bundles_post_ra>
